<compile_context>
chip_gen: v7x
topology: tpu7x:2x2x1
jax: 0.10.0
libtpu: 0.0.40
codegen_flags: <defaults>
</compile_context>

<pallas_src>
import functools

import jax
import jax.numpy as jnp
from jax import lax
from jax.experimental import pallas as pl
from jax.experimental.pallas import tpu as pltpu


_SUBLANE = 16  # bf16 sublane tile: conv-channel padding target for tap alignment


# ---------------------------------------------------------------------------
# One-time probe: pin down the hardware roll convention (guards against any
# convention difference across jax/Mosaic versions). Cached; runs once.
# ---------------------------------------------------------------------------
@functools.lru_cache(maxsize=1)
def _roll_sign():
    def k(x_ref, o_ref):
        o_ref[...] = pltpu.roll(x_ref[...], 1, axis=1)

    x = jnp.arange(8 * 256, dtype=jnp.int32).reshape(8, 256)
    y = pl.pallas_call(k, out_shape=jax.ShapeDtypeStruct((8, 256), jnp.int32))(x)
    # numpy convention: out[..., i] = in[..., i-1]  =>  y[0, 1] == x[0, 0] == 0
    return 1 if int(y[0, 1]) == 0 else -1


# ---------------------------------------------------------------------------
# Kernel body
# ---------------------------------------------------------------------------
def _down_up_kernel(seg_ref, x_ref, *refs, n_c, K, pad, W, H, HW, cpads, eps,
                    roll_sign):
    w_refs = refs[:n_c]                       # (Cout, K*K*cpad_i) bf16 each
    b_refs = refs[n_c:2 * n_c]                # (Cout, 1) f32 each
    o_ref = refs[2 * n_c]                     # (Cout, L) f32

    L = x_ref.shape[1]                        # B_TILE * H * W  (fused lane axis)
    bt = seg_ref.shape[0]                     # images fused per grid step

    # Hoisted lane-index wrap masks, shape (1, L), broadcast over sublanes.
    lane = lax.broadcasted_iota(jnp.int32, (1, L), 1)
    lane_w = lane % W
    lane_h = (lane % HW) // W
    col_hi = {d: lane_w >= (W - d) for d in range(1, pad + 1)}
    col_lo = {d: lane_w < d for d in range(1, pad + 1)}
    row_hi = {d: lane_h >= (H - d) for d in range(1, pad + 1)}
    row_lo = {d: lane_h < d for d in range(1, pad + 1)}

    def rot(v, shift):
        # np.roll semantics on the fused lanes: out[..., i] = v[..., (i - shift) % L]
        s = (roll_sign * shift) % L
        if s == 0:
            return v
        return pltpu.roll(v, s, axis=v.ndim - 1)          # XLU lane rotation

    def col_tap(y, dx):
        # tap(h, w) = y(h, (w + dx) mod W) per image row (circular in w).
        if dx == 0:
            return y
        main = rot(y, -dx)
        if dx > 0:
            return jnp.where(col_hi[dx], rot(y, W - dx), main)
        return jnp.where(col_lo[-dx], rot(y, -(dx + W)), main)

    def row_tap(v, dy):
        # tap(h, w) = v((h + dy) mod H, w); fix keeps the wrap inside each image.
        if dy == 0:
            return v
        main = rot(v, -dy * W)
        if dy > 0:
            return jnp.where(row_hi[dy], rot(v, HW - dy * W), main)
        return jnp.where(row_lo[-dy], rot(v, -(dy * W + HW)), main)

    def conv(y, i):
        cpad = cpads[i]
        yb = y.astype(jnp.bfloat16)                        # cast BEFORE tap build
        cin = yb.shape[0]
        if cin < cpad:
            # One small pad against zeros so every later concat / contraction
            # row is aligned to the bf16 (16, 128) tile.
            yb = jnp.concatenate(
                [yb, jnp.zeros((cpad - cin, L), jnp.bfloat16)], axis=0)
        # (K*cpad, L): tile-aligned concat of the K column taps ...
        cols = jnp.concatenate([col_tap(yb, kx - pad) for kx in range(K)], axis=0)
        # ... then K row rolls of the whole block -> (K*K*cpad, L), order (ky, kx, c)
        taps = jnp.concatenate([row_tap(cols, ky - pad) for ky in range(K)], axis=0)
        acc = jnp.dot(w_refs[i][...], taps,
                      preferred_element_type=jnp.float32)  # one wide MXU matmul
        return acc + b_refs[i][...]                        # (Cout, L) f32

    def elu(v):
        # alpha = 1; clamp exp arg so the untaken branch cannot overflow.
        return jnp.where(v > 0.0, v, jnp.exp(jnp.minimum(v, 0.0)) - 1.0)

    inv_hw = 1.0 / HW
    inv_hw1 = 1.0 / (HW - 1)                  # unbiased variance (torch.var_mean)

    if bt == 1:
        # Single image per step: plain lane reductions.
        def layer_norm(h):
            mu = jnp.mean(h, axis=-1, keepdims=True)
            d = h - mu
            var = jnp.sum(d * d, axis=-1, keepdims=True) * inv_hw1
            return d * lax.rsqrt(var + eps)
    else:
        # Per-image stats via the MXU: segment-reduce and broadcast-back with a
        # 0/1 (bt, L) matrix; h stays in the lane-dense (Cout, L) layout.
        seg = seg_ref[...]                                  # (bt, L) f32
        nt = (((1,), (1,)), ((), ()))                       # contract lanes of both

        def layer_norm(h):
            s = lax.dot_general(h, seg, nt,
                                preferred_element_type=jnp.float32)       # (C, bt)
            mu = s * inv_hw
            d = h - jnp.dot(mu, seg, preferred_element_type=jnp.float32)  # (C, L)
            v = lax.dot_general(d * d, seg, nt,
                                preferred_element_type=jnp.float32) * inv_hw1
            r = lax.rsqrt(v + eps)                                        # (C, bt)
            return d * jnp.dot(r, seg, preferred_element_type=jnp.float32)

    h = elu(conv(x_ref[...], 0))                            # (Cout, L) f32
    for i in range(1, n_c):
        h = elu(h + conv(layer_norm(h), i))
    o_ref[...] = h.astype(o_ref.dtype)                      # lane-dense store


# ---------------------------------------------------------------------------
# Wrapper
# ---------------------------------------------------------------------------
def _pick_b_tile(N, cin, cout, hw, *, max_tile=32, target_bytes=4 << 20):
    """Images fused per grid step: large enough to amortize the ~0.35us per-step
    overhead and feed the MXU long lane streams, small enough to keep >= 2 grid
    steps (megacore / v7x 2 TCs) and stay well inside v7x's 64 MiB VMEM."""
    per_img = cin * hw * 2 + cout * hw * 4        # bf16 input + f32 output bytes
    bt = int(max(1, min(N, max_tile, target_bytes // per_img)))
    while bt > 1 and pl.cdiv(N, bt) < 2:          # keep both TensorCores busy
        bt -= 1
    if N % bt:                                    # prefer a nearby exact divisor
        for cand in range(bt, max(1, (3 * bt) // 4) - 1, -1):
            if N % cand == 0:
                bt = cand
                break
    return bt


def down_up_layer(x_nchw, params, *, kernel_sz=3, eps=1e-5, b_tile=None):
    """params = [w0, b0, w1, b1, ...]; w_i: (Cout, Cin_i, K, K), b_i: (Cout,)."""
    assert len(params) % 2 == 0 and len(params) >= 2
    # TODO(synk): tuple kernel_sz (asymmetric padding (ph, 0)) is not implemented;
    # only square odd kernels with full circular padding are supported here.
    assert isinstance(kernel_sz, int) and kernel_sz % 2 == 1
    n_c = len(params) // 2
    N, Cin, H, W = x_nchw.shape
    Cout = params[0].shape[0]
    K = kernel_sz
    pad = (K - 1) // 2
    HW = H * W
    assert pad < H and pad < W
    # TODO(synk): pad the spatial dims in the wrapper when H*W % 128 != 0 so the
    # fused lane axis stays 128-aligned; not needed for the shapes used here.
    assert HW % 128 == 0

    if b_tile is None:
        b_tile = _pick_b_tile(N, Cin, Cout, HW)
    b_tile = int(max(1, min(b_tile, N)))
    n_blocks = pl.cdiv(N, b_tile)
    n_pad = n_blocks * b_tile                    # zero-pad batch -> full blocks only
    L = b_tile * HW
    grid = (n_blocks,)

    # Channel-major fused-lane layout (Cin, N*HW) in bf16: the lane axis carries
    # batch*spatial (long MXU streams, unmasked stores); bf16 halves input DMA.
    x2 = jnp.transpose(x_nchw.astype(jnp.bfloat16).reshape(N, Cin, HW),
                       (1, 0, 2)).reshape(Cin, N * HW)
    if n_pad != N:
        x2 = jnp.pad(x2, ((0, 0), (0, (n_pad - N) * HW)))   # zero images: benign

    # Per-conv weights: pad Cin to the bf16 sublane tile and flatten (ky, kx, c)
    # to match the tap row order; biases as (Cout, 1) f32. Separate operands so
    # the kernel never slices at non-aligned lane offsets.
    w_list, b_list, cpads = [], [], []
    for i in range(n_c):
        w = params[2 * i]
        cin_i = w.shape[1]
        cpad = -(-cin_i // _SUBLANE) * _SUBLANE
        wp = jnp.pad(w.astype(jnp.float32),
                     ((0, 0), (0, cpad - cin_i), (0, 0), (0, 0)))
        w_list.append(jnp.transpose(wp, (0, 2, 3, 1))
                      .reshape(Cout, K * K * cpad).astype(jnp.bfloat16))
        b_list.append(params[2 * i + 1].reshape(Cout, 1).astype(jnp.float32))
        cpads.append(cpad)

    # 0/1 segment matrix: which image each fused lane belongs to (drives the
    # per-image LayerNorm reduce / broadcast matmuls).
    seg = (jnp.arange(L, dtype=jnp.int32)[None, :] // HW
           == jnp.arange(b_tile, dtype=jnp.int32)[:, None]).astype(jnp.float32)

    kernel = functools.partial(
        _down_up_kernel, n_c=n_c, K=K, pad=pad, W=W, H=H, HW=HW,
        cpads=tuple(cpads), eps=eps, roll_sign=_roll_sign())

    in_specs = [pl.BlockSpec(seg.shape, lambda n: (0, 0)),
                pl.BlockSpec((Cin, L), lambda n: (0, n))]
    in_specs += [pl.BlockSpec(w.shape, lambda n: (0, 0)) for w in w_list]
    in_specs += [pl.BlockSpec(b.shape, lambda n: (0, 0)) for b in b_list]

    out = pl.pallas_call(
        kernel,
        out_shape=jax.ShapeDtypeStruct((Cout, n_pad * HW), jnp.float32),
        grid=grid,
        in_specs=in_specs,
        out_specs=pl.BlockSpec((Cout, L), lambda n: (0, n)),
        compiler_params=pltpu.CompilerParams(
            dimension_semantics=("parallel",),          # batch axis -> megacore
            vmem_limit_bytes=48 * 1024 * 1024),         # headroom under v7x 64 MiB
    )(seg, x2, *w_list, *b_list)

    if n_pad != N:
        out = out[:, :N * HW]
    # Back to the module's NCHW layout (single XLA transpose on the output).
    return jnp.transpose(out.reshape(Cout, N, HW), (1, 0, 2)).reshape(N, Cout, H, W)


# ---------------------------------------------------------------------------
# Pure-JAX reference (mirrors the kernel's precision policy: bf16 conv operands,
# f32 accumulation and element-wise math) for the sanity check.
# ---------------------------------------------------------------------------
def _ref_forward(x_nchw, params, *, kernel_sz=3, eps=1e-5):
    n_c = len(params) // 2
    K = kernel_sz
    pad = (K - 1) // 2
    x = x_nchw.astype(jnp.float32)

    def conv(v, w, b):
        vp = jnp.pad(v, ((0, 0), (0, 0), (pad, pad), (pad, pad)), mode="wrap")
        y = lax.conv_general_dilated(
            vp.astype(jnp.bfloat16), w.astype(jnp.bfloat16), (1, 1), "VALID",
            dimension_numbers=("NCHW", "OIHW", "NCHW"),
            preferred_element_type=jnp.float32)
        return y + b.reshape(1, -1, 1, 1).astype(jnp.float32)

    def elu(v):
        return jnp.where(v > 0.0, v, jnp.exp(jnp.minimum(v, 0.0)) - 1.0)

    def ln(v):
        mu = jnp.mean(v, axis=(-2, -1), keepdims=True)
        d = v - mu
        var = jnp.sum(d * d, axis=(-2, -1), keepdims=True) / (
            v.shape[-2] * v.shape[-1] - 1)
        return d / jnp.sqrt(var + eps)

    h = elu(conv(x, params[0], params[1]))
    for i in range(1, n_c):
        h = elu(h + conv(ln(h), params[2 * i], params[2 * i + 1]))
    return h


# ---------------------------------------------------------------------------
if __name__ == "__main__":
    N, input_c, output_c, H, W = 4, 4, 8, 16, 16
    kernel_sz, n_c = 3, 2

    key = jax.random.PRNGKey(0)
    keys = jax.random.split(key, 2 * n_c + 1)

    params = []
    for i in range(n_c):
        cin_i = input_c if i == 0 else output_c
        w = 0.1 * jax.random.normal(
            keys[2 * i], (output_c, cin_i, kernel_sz, kernel_sz), dtype=jnp.float32)
        b = 0.1 * jax.random.normal(keys[2 * i + 1], (output_c,), dtype=jnp.float32)
        params += [w, b]

    x = jax.random.normal(keys[-1], (N, input_c, H, W), dtype=jnp.float32)

    out = jax.block_until_ready(down_up_layer(x, params, kernel_sz=kernel_sz))
    ref = jax.block_until_ready(_ref_forward(x, params, kernel_sz=kernel_sz))

    assert out.shape == (N, output_c, H, W)
    err = float(jnp.max(jnp.abs(out - ref)))
    # bf16 MXU operands (f32 accumulation) vs the f32 torch module: ~1e-3 level
    # error that compounds over n_c stacked convs; 2e-2 is a safe, tight bound.
    assert err < 2e-2, err

    print("KERNEL_OK")
</pallas_src>

<mosaic_0001>
module attributes {stable_mosaic.version = 11 : i64} {
  func.func @k(%arg0: memref<8x256xi32, #tpu.memory_space<vmem>>, %arg1: memref<8x256xi32, #tpu.memory_space<vmem>>) attributes {dimension_semantics = [], scalar_prefetch = 0 : i64, scratch_operands = 0 : i64, tpu.core_type = #tpu.core_type<tc>} {
    %c0 = arith.constant 0 : index
    %c0_0 = arith.constant 0 : index
    %0 = vector.load %arg0[%c0, %c0_0] : memref<8x256xi32, #tpu.memory_space<vmem>>, vector<8x256xi32>
    %c1_i32 = arith.constant 1 : i32
    %1 = tpu.dynamic_rotate %0 by %c1_i32 dim 1 : vector<8x256xi32>, i32 -> vector<8x256xi32>
    %c0_1 = arith.constant 0 : index
    %c0_2 = arith.constant 0 : index
    %2 = vector.load %arg1[%c0_1, %c0_2] : memref<8x256xi32, #tpu.memory_space<vmem>>, vector<8x256xi32>
    tpu.vector_store %arg1[%c0_1, %c0_2], %1 {strides = array<i32>} : memref<8x256xi32, #tpu.memory_space<vmem>>, vector<8x256xi32>,
    return
  }
}

</mosaic_0001>

<bundles_post_ra>
// kernel: tpu_custom_call.1
= control target key start
LH: loop header
LB: loop body
LE: loop exit
PB: predicated region body
PF: predicated region fallthrough
CT: control target
= control target key end

     0   :  { %6 = vsyncpa [#allocation3], 0  ;;  %s137_s0 = inlined_call_operand.hbm [shape: s32[8,256], index: 0, kind: input, shape index: {}]   ;;  %s138_s1 = inlined_call_operand.hbm [shape: s32[8,256], index: 1, kind: output, shape index: {}]  }
   0x1   :  { %7 = vsyncpa [#allocation4], 0  ;;  %s100_s6 = smov [#allocation2]   ;;  %s52_s10 = scalar_lea.hbm %s137_s0, 256 }
   0x2   :  { %s14_s7 = sshll.u32 %s100_s6, 4  ;;  %p53_p0 = scmp.ne.s32.totalorder %s137_s0, %s52_s10  ;;  %s15_s7 = int_to_ptr.vmem [resolvable:$true] %s14_s7 }
   0x3   :  { %p56_p1 = scmp.lt.u32.totalorder %s52_s10, %s137_s0 }
   0x5   :  { %p58_p2 = pnand %p56_p1, %p53_p0 }
   0x7   :  { %61 = shalt.err (!%p58_p2)
}
   0x8   :  { %s62_s15 = scalar_lea.vmem %s15_s7, 256  ;;  %p67_p4 = scmp.lt.s32.totalorder %s15_s7, %s15_s7 }
   0x9   :  { %p63_p3 = scmp.ne.s32.totalorder %s15_s7, %s62_s15  ;;  %p68_p5 = scmp.lt.s32.totalorder %s62_s15, %s62_s15 }
   0xb   :  { %p69_p6 = por %p68_p5, %p67_p4 }
   0xd   :  { %p70_p7 = pnand %p69_p6, %p63_p3 }
   0xf   :  { %73 = shalt.err (!%p70_p7)
}
  0x10   :  { %17 = dma.hbm_to_vmem [thread:$0]  %s137_s0, 256, %s15_s7, [#allocation3]  }
  0x11   :  { %96 = dma.done.wait [#allocation3], 256  }
  0x12   :  { %97 = vsyncadd [#allocation3], 4294967040  ;;  %v21_v0 = vld [vmem:[#allocation2] sm:$0xff]  ;;  %s101_s18 = smov 1   ;;  %v22_v1 = vld [vmem:[#allocation2 + $0x8] sm:$0xff]  ;;  %v27_v2 = vlaneseq  ;;  %s102_s19 = smov [#allocation5]  }
  0x13   :  { %23 = vrot.lane.b32.xlu0 %v21_v0, %s101_s18  ;;  %s40_s20 = sshll.u32 %s102_s19, 4  ;;  %s41_s20 = int_to_ptr.vmem [resolvable:$true] %s40_s20 }
  0x14   :  { %v28_v3 = vand.u32 127, %v27_v2  ;;  %s74_s0 = scalar_lea.vmem %s41_s20, 256  ;;  %p79_p9 = scmp.lt.s32.totalorder %s41_s20, %s41_s20 }
  0x15   :  { %p75_p8 = scmp.ne.s32.totalorder %s41_s20, %s74_s0  ;;  %p80_p10 = scmp.lt.s32.totalorder %s74_s0, %s74_s0 }
  0x16   :  { %vm29_vm0 = vcmp.lt.s32.totalorder %v28_v3, 1 }
  0x17   :  { %25 = vrot.lane.b32.xlu0 %v22_v1, %s101_s18  ;;  %p81_p11 = por %p80_p10, %p79_p9 }
  0x19   :  { %p82_p12 = pnand %p81_p11, %p75_p8 }
  0x85   :  { %v24_v4 = vpop.permute.xlu0 %23 }
  0x89   :  { %v26_v5 = vpop.permute.xlu0 %25 }
  0x8a   :  { %v30_v6 = vsel %vm29_vm0, %v24_v4, %v26_v5  ;;  %v31_v7 = vsel %vm29_vm0, %v26_v5, %v24_v4 }
  0x8b   :  { %32 = vst [vmem:[#allocation5] sm:$0xff] %v31_v7  ;;  %33 = vst [vmem:[#allocation5 + $0x8] sm:$0xff] %v30_v6 }
  0x8c   :  { %85 = shalt.err (!%p82_p12)
}
  0x8d   :  { %s86_s23 = scalar_lea.hbm %s138_s1, 256 }
  0x8e   :  { %p87_p13 = scmp.ne.s32.totalorder %s138_s1, %s86_s23  ;;  %p90_p0 = scmp.lt.u32.totalorder %s86_s23, %s138_s1 }
  0x90   :  { %p92_p1 = pnand %p90_p0, %p87_p13 }
  0x92   :  { %95 = shalt.err (!%p92_p1)
}
  0x93   :  { %43 = dma.vmem_to_hbm [thread:$0]  %s41_s20, 256, %s138_s1, [#allocation4]  }
  0x94   :  { %98 = dma.done.wait [#allocation4], 256  }
  0x95   :  { %99 = vsyncadd [#allocation4], 4294967040 }
  0x96   :  { %47 = vsyncpa [#allocation3], 1 }
  0x97   :  { %48 = vsyncpa [#allocation4], 1 }

</bundles_post_ra>
